<compile_context>
chip_gen: v7x
topology: tpu7x:2x2x1
jax: 0.10.0
libtpu: 0.0.40
codegen_flags: <defaults>
</compile_context>

<pallas_src>
import math

import jax
import jax.numpy as jnp
from jax.experimental import pallas as pl
from jax.experimental.pallas import tpu as pltpu


def _round_up(x, m):
    return ((x + m - 1) // m) * m


# --------------------------- per-generation budget ---------------------------


def _tpu_defaults():
    """VMEM / tile budget per TPU generation (v5e/v6e: 128 MiB, v7x: 64 MiB)."""
    cap = 64 * 1024 * 1024
    try:
        info = pltpu.get_tpu_info()
        cap = int(getattr(info, "vmem_capacity_bytes", cap))
    except Exception:
        pass
    if cap >= 100 * 1024 * 1024:                      # v5e / v6e
        return dict(vmem_limit=96 * 1024 * 1024, v_tile=2048, n_tile=256)
    return dict(vmem_limit=44 * 1024 * 1024, v_tile=1024, n_tile=256)  # v7x


_DEFAULTS = _tpu_defaults()


# ----------------------------- kernels --------------------------------------


def matmul_bias_kernel(a_ref, w_ref, b_ref, out_ref):
    # a: (n_tile, K) bf16 ; w: (K, v_tile) bf16 ; b: (1, v_tile) f32
    acc = jnp.dot(a_ref[...], w_ref[...], preferred_element_type=jnp.float32)
    out_ref[...] = (acc + b_ref[...]).astype(out_ref.dtype)


def matmul_bias_alias_kernel(a_ref, w_ref, b_ref, _logits_hbm_ref, out_ref):
    # _logits_hbm_ref is the aliased full logits buffer (memory_space=pl.ANY);
    # it is only present so input_output_aliases can map it onto the output.
    matmul_bias_kernel(a_ref, w_ref, b_ref, out_ref)


def proj_kernel(x_ref, wp_ref, out_ref):
    out_ref[...] = jnp.dot(x_ref[...], wp_ref[...],
                           preferred_element_type=jnp.float32).astype(out_ref.dtype)


# --------------------------- per-cluster calls -------------------------------


def _run_proj(x_pad, wp_t, n_tile, vmem_limit):
    """proj = x @ wp_t, full dim kept resident (dim_pad is small)."""
    n_pad, d = x_pad.shape
    dim_pad = wp_t.shape[1]
    return pl.pallas_call(
        proj_kernel,
        out_shape=jax.ShapeDtypeStruct((n_pad, dim_pad), jnp.bfloat16),
        grid=(n_pad // n_tile,),
        in_specs=[pl.BlockSpec((n_tile, d), lambda i: (i, 0)),
                  pl.BlockSpec((d, dim_pad), lambda i: (0, 0))],
        out_specs=pl.BlockSpec((n_tile, dim_pad), lambda i: (i, 0)),
        compiler_params=pltpu.CompilerParams(
            dimension_semantics=("parallel",),
            vmem_limit_bytes=vmem_limit),
        cost_estimate=pl.CostEstimate(
            flops=2 * n_pad * d * dim_pad, transcendentals=0,
            bytes_accessed=(n_pad * d + d * dim_pad + n_pad * dim_pad) * 2),
    )(x_pad, wp_t)


def _run_cluster(a, w_t, b_pad, base_block, n_tile, v_tile,
                 logits_buf, out_sd, vmem_limit):
    """logits[:, base : base+Vp] = a @ w_t + b, written into the shared buffer.

    Grid = (vocab OUTER, rows inner): the weight block index is constant across
    the inner row loop, so each (K, v_tile) weight slab is DMA'd exactly once.
    Both axes are 'parallel' (vocab axis shards across v7x's two TensorCores).
    """
    n_pad, k = a.shape
    vp = w_t.shape[1]
    grid = (vp // v_tile, n_pad // n_tile)
    out_bytes = jnp.dtype(out_sd.dtype).itemsize
    cost = pl.CostEstimate(
        flops=2 * n_pad * k * vp,
        transcendentals=0,
        bytes_accessed=k * vp * 2 + (vp // v_tile) * n_pad * k * 2
                       + vp * 4 + n_pad * vp * out_bytes)
    in_specs = [
        pl.BlockSpec((n_tile, k), lambda vj, ri: (ri, 0)),   # small, streamed
        pl.BlockSpec((k, v_tile), lambda vj, ri: (0, vj)),   # weight: 1 DMA / vocab tile
        pl.BlockSpec((1, v_tile), lambda vj, ri: (0, vj)),
    ]
    out_spec = pl.BlockSpec((n_tile, v_tile),
                            lambda vj, ri: (ri, base_block + vj))
    cp = pltpu.CompilerParams(dimension_semantics=("parallel", "parallel"),
                              vmem_limit_bytes=vmem_limit)
    if logits_buf is None:
        # First cluster creates the shared buffer (uncovered columns are never
        # read downstream, so no zero-init pass is needed).
        return pl.pallas_call(
            matmul_bias_kernel, out_shape=out_sd, grid=grid,
            in_specs=in_specs, out_specs=out_spec,
            compiler_params=cp, cost_estimate=cost,
        )(a, w_t, b_pad)
    return pl.pallas_call(
        matmul_bias_alias_kernel, out_shape=out_sd, grid=grid,
        in_specs=in_specs + [pl.BlockSpec(memory_space=pl.ANY)],
        out_specs=out_spec,
        input_output_aliases={3: 0},           # write in place into the shared buffer
        compiler_params=cp, cost_estimate=cost,
    )(a, w_t, b_pad, logits_buf)


# ------------------------- wrapper / param prep ------------------------------


def preprocess_params(params, cluster_sizes, *, v_tile=None, mxu_k=256):
    """Pre-transpose to (in, out) layout, pad widths to 128-lane multiples,
    cast to bf16, lay every cluster out inside ONE shared logits buffer and
    decide (MXU- and bytes-aware) whether to fold the two Linears into one."""
    v_tile_max = v_tile if v_tile is not None else _DEFAULTS["v_tile"]
    assert v_tile_max % 128 == 0
    clusters = []
    col = 0
    for (wp, wo, b), size in zip(params, cluster_sizes):
        if size == 0:
            continue
        dim, input_dim = wp.shape
        vp = _round_up(size, 128)
        # largest lane tile <= v_tile_max that divides the padded cluster width
        vt = min(v_tile_max, vp)
        while vp % vt:
            vt -= 128
        base = _round_up(col, vt)          # column base inside the shared buffer
        col = base + vp

        b_pad = jnp.zeros((1, vp), jnp.float32).at[0, :size].set(
            jnp.asarray(b, jnp.float32).reshape(-1))

        # Fuse only when it wins on both MXU work (K rounded to the MXU depth)
        # and streamed weight bytes.  Cluster 0 (dim == input_dim) always fuses.
        dim_eff = _round_up(dim, mxu_k)
        fuse = (size * input_dim <= dim_eff * (input_dim + size)
                and size * input_dim <= dim * (input_dim + size))
        if fuse:
            wf = (jnp.asarray(wo, jnp.float32) @ jnp.asarray(wp, jnp.float32)).T
            w_t = jnp.zeros((input_dim, vp), jnp.float32).at[:, :size].set(wf)
            clusters.append(dict(kind="fused", size=size, v_tile=vt, base=base,
                                 w_t=w_t.astype(jnp.bfloat16), b=b_pad))
        else:
            dim_pad = _round_up(dim, 128)  # lane-dense proj, no masked stores
            wp_t = jnp.zeros((input_dim, dim_pad), jnp.float32).at[:, :dim].set(
                jnp.asarray(wp, jnp.float32).T)
            wo_t = jnp.zeros((dim_pad, vp), jnp.float32).at[:dim, :size].set(
                jnp.asarray(wo, jnp.float32).T)
            clusters.append(dict(kind="two_stage", size=size, v_tile=vt, base=base,
                                 wp_t=wp_t.astype(jnp.bfloat16),
                                 wo_t=wo_t.astype(jnp.bfloat16), b=b_pad))
    # Fast path: if the layout is already contiguous and unpadded, the shared
    # buffer IS the final logits and no extraction pass is needed at all.
    off, contiguous = 0, True
    for c in clusters:
        contiguous &= (c["base"] == off and c["size"] % 128 == 0)
        off += c["size"]
    return dict(clusters=clusters, total_vp=col, contiguous=contiguous,
                vocab_size=sum(c["size"] for c in clusters))


def _pick_n_tile(n, n_tile_max):
    """Largest row tile (multiple of 16, <= n_tile_max) minimising row padding."""
    cap = max(16, min(n_tile_max, _round_up(n, 16)))
    best_t, best_pad = 16, None
    for t in range(16, cap + 1, 16):
        pad = _round_up(n, t) - n
        if best_pad is None or pad < best_pad or (pad == best_pad and t > best_t):
            best_t, best_pad = t, pad
    return best_t


def adaptive_softmax_forward(x_flat, processed, *, n_tile=None,
                             out_dtype=jnp.bfloat16, vmem_limit=None):
    """x_flat: (N, input_dim) f32. Returns (N, vocab_size) `out_dtype` logits.
    Wrap calls to this function in jax.jit so the chained in-place writes into
    the shared logits buffer alias without copies."""
    n, d = x_flat.shape
    n_tile_max = n_tile if n_tile is not None else _DEFAULTS["n_tile"]
    vmem_limit = vmem_limit if vmem_limit is not None else _DEFAULTS["vmem_limit"]
    nt = _pick_n_tile(n, n_tile_max)
    n_pad = _round_up(n, nt)

    x_pad = x_flat.astype(jnp.bfloat16)
    if n_pad != n:
        x_pad = jnp.zeros((n_pad, d), jnp.bfloat16).at[:n].set(x_pad)

    out_sd = jax.ShapeDtypeStruct((n_pad, processed["total_vp"]), out_dtype)
    buf = None
    for c in processed["clusters"]:
        if c["kind"] == "fused":
            a, w_t = x_pad, c["w_t"]
        else:
            a, w_t = _run_proj(x_pad, c["wp_t"], nt, vmem_limit), c["wo_t"]
        buf = _run_cluster(a, w_t, c["b"], c["base"] // c["v_tile"],
                           nt, c["v_tile"], buf, out_sd, vmem_limit)

    if processed["contiguous"]:
        return buf[:n, :processed["vocab_size"]]
    # Padded / gapped column layout: one extraction pass (bf16) at the end.
    pieces = [buf[:n, c["base"]:c["base"] + c["size"]]
              for c in processed["clusters"]]
    return jnp.concatenate(pieces, axis=-1)


# ---------------------- synthetic params + references ------------------------


def build_params(key, vocab_size, input_dim, cutoff, factor):
    """Deterministic synthetic parameters mirroring AdaptiveSoftmax.__init__ shapes."""
    cluster_sizes = [cutoff[0]]
    for i in range(1, len(cutoff)):
        cluster_sizes.append(cutoff[i] - cutoff[i - 1])
    cluster_sizes.append(vocab_size - cutoff[-1])

    params = []
    for i, csize in enumerate(cluster_sizes):
        dim = int(input_dim // (factor ** i))
        key, k1, k2 = jax.random.split(key, 3)
        bound = 1.0 / math.sqrt(input_dim)
        wp = jax.random.uniform(k1, (dim, input_dim), jnp.float32, -bound, bound)
        wo = jax.random.normal(k2, (csize, dim), jnp.float32) * (dim ** -0.5)
        b = jnp.zeros((1, csize), jnp.float32)
        params.append((wp, wo, b))
    return params, cluster_sizes


def reference_forward_f32(x_flat, params):
    """Plain f32 two-stage reference of the original module math."""
    outs = []
    for (wp, wo, b) in params:
        proj = x_flat @ wp.T
        outs.append(proj @ wo.T + b.reshape(1, -1))
    return jnp.concatenate(outs, axis=-1)


def reference_forward_processed(x_flat, processed):
    """Reference using the same bf16 operands / f32 accumulation as the kernels."""
    x16 = x_flat.astype(jnp.bfloat16)
    outs = []
    for c in processed["clusters"]:
        if c["kind"] == "fused":
            out = jnp.dot(x16, c["w_t"], preferred_element_type=jnp.float32) + c["b"]
        else:
            proj = jnp.dot(x16, c["wp_t"], preferred_element_type=jnp.float32)
            out = jnp.dot(proj.astype(jnp.bfloat16), c["wo_t"],
                          preferred_element_type=jnp.float32) + c["b"]
        outs.append(out[:, :c["size"]])
    return jnp.concatenate(outs, axis=-1)


if __name__ == "__main__":
    # Small, module-consistent shapes; the tail cluster exercises the two-stage
    # path (proj kernel + vocab-outer streamed weight) with multi-tile grids.
    batch, seq, input_dim = 2, 16, 64
    vocab_size = 352
    cutoff = [32, 96]          # cluster sizes -> [32, 64, 256]
    factor = 2                 # projection dims -> 64, 32, 16

    key = jax.random.PRNGKey(0)
    key, kx = jax.random.split(key)
    x = jax.random.normal(kx, (batch, seq, input_dim), jnp.float32)
    x_flat = x.reshape(-1, input_dim)               # (32, 64)

    params, cluster_sizes = build_params(key, vocab_size, input_dim, cutoff, factor)

    # Small tiles so this tiny test still runs multi-tile grids; production
    # defaults come from _tpu_defaults() (per-generation VMEM/tile budget).
    processed = preprocess_params(params, cluster_sizes, v_tile=128)

    fwd = jax.jit(lambda xf: adaptive_softmax_forward(xf, processed, n_tile=16))
    logits = jax.block_until_ready(fwd(x_flat))

    assert logits.shape == (batch * seq, vocab_size)
    assert logits.dtype == jnp.bfloat16

    # Tight check against the same bf16-operand / f32-accumulation math.
    ref_bf16 = reference_forward_processed(x_flat, processed)
    err = float(jnp.max(jnp.abs(logits.astype(jnp.float32) - ref_bf16)))
    assert err < 3e-2, err

    # Loose check against the full-precision original-module math.
    ref_f32 = reference_forward_f32(x_flat, params)
    err2 = float(jnp.max(jnp.abs(logits.astype(jnp.float32) - ref_f32)))
    assert err2 < 1.5e-1, err2

    # TODO(synk): training path (target != None) does data-dependent boolean-mask
    # gathering + per-cluster cross_entropy (and dropout); only the dense
    # inference logits path is implemented as Pallas kernels here.
    print("KERNEL_OK")
</pallas_src>

<mosaic_0001>
module attributes {stable_mosaic.version = 11 : i64} {
  func.func @matmul_bias_kernel(%arg0: i32, %arg1: i32, %arg2: memref<16x64xbf16, #tpu.memory_space<vmem>>, %arg3: memref<64x128xbf16, #tpu.memory_space<vmem>>, %arg4: memref<1x128xf32, #tpu.memory_space<vmem>>, %arg5: memref<16x128xbf16, #tpu.memory_space<vmem>>) attributes {dimension_semantics = [#tpu.dimension_semantics<parallel>, #tpu.dimension_semantics<parallel>], iteration_bounds = array<i64: 1, 2>, scalar_prefetch = 0 : i64, scratch_operands = 0 : i64, tpu.core_type = #tpu.core_type<tc>, window_params = [{transform_indices = @transform_0, window_bounds = array<i64: 16, 64>}, {transform_indices = @transform_1, window_bounds = array<i64: 64, 128>}, {transform_indices = @transform_2, window_bounds = array<i64: 1, 128>}, {transform_indices = @transform_3, window_bounds = array<i64: 16, 128>}]} {
    %c0 = arith.constant 0 : index
    %c0_0 = arith.constant 0 : index
    %0 = vector.load %arg2[%c0, %c0_0] : memref<16x64xbf16, #tpu.memory_space<vmem>>, vector<16x64xbf16>
    %c0_1 = arith.constant 0 : index
    %c0_2 = arith.constant 0 : index
    %1 = vector.load %arg3[%c0_1, %c0_2] : memref<64x128xbf16, #tpu.memory_space<vmem>>, vector<64x128xbf16>
    %cst = arith.constant dense<0.000000e+00> : vector<16x128xf32>
    %2 = tpu.matmul %0, %1, %cst {dimension_numbers = #tpu.dot_dimension_numbers<[1], [0], [0], [1], [0, 0, 1, 1], [], []>} : vector<16x64xbf16>, vector<64x128xbf16>, vector<16x128xf32> -> vector<16x128xf32>
    %c0_3 = arith.constant 0 : index
    %c0_4 = arith.constant 0 : index
    %3 = vector.load %arg4[%c0_3, %c0_4] : memref<1x128xf32, #tpu.memory_space<vmem>>, vector<1x128xf32>
    %4 = vector.broadcast %3 : vector<1x128xf32> to vector<16x128xf32>
    %5 = arith.addf %2, %4 : vector<16x128xf32>
    %6 = arith.truncf %5 : vector<16x128xf32> to vector<16x128xbf16>
    %c0_5 = arith.constant 0 : index
    %c0_6 = arith.constant 0 : index
    %7 = vector.load %arg5[%c0_5, %c0_6] : memref<16x128xbf16, #tpu.memory_space<vmem>>, vector<16x128xbf16>
    tpu.vector_store %arg5[%c0_5, %c0_6], %6 {strides = array<i32>} : memref<16x128xbf16, #tpu.memory_space<vmem>>, vector<16x128xbf16>,
    return
  }
  func.func @transform_0(%arg0: i32, %arg1: i32) -> (i32, i32) {
    %c0_i32 = arith.constant 0 : i32
    %c0_i32_0 = arith.constant 0 : i32
    return %arg1, %c0_i32 : i32, i32
  }
  func.func @transform_1(%arg0: i32, %arg1: i32) -> (i32, i32) {
    %c0_i32 = arith.constant 0 : i32
    %c0_i32_0 = arith.constant 0 : i32
    return %c0_i32, %arg0 : i32, i32
  }
  func.func @transform_2(%arg0: i32, %arg1: i32) -> (i32, i32) {
    %c0_i32 = arith.constant 0 : i32
    %c0_i32_0 = arith.constant 0 : i32
    return %c0_i32, %arg0 : i32, i32
  }
  func.func @transform_3(%arg0: i32, %arg1: i32) -> (i32, i32) {
    %c0_i32 = arith.constant 0 : i32
    %0 = arith.addi %c0_i32, %arg0 : i32
    %c0_i32_0 = arith.constant 0 : i32
    return %arg1, %0 : i32, i32
  }
}

module attributes {stable_mosaic.version = 11 : i64} {
  func.func @proj_kernel(%arg0: i32, %arg1: memref<16x64xbf16, #tpu.memory_space<vmem>>, %arg2: memref<64x128xbf16, #tpu.memory_space<vmem>>, %arg3: memref<16x128xbf16, #tpu.memory_space<vmem>>) attributes {dimension_semantics = [#tpu.dimension_semantics<parallel>], iteration_bounds = array<i64: 2>, scalar_prefetch = 0 : i64, scratch_operands = 0 : i64, tpu.core_type = #tpu.core_type<tc>, window_params = [{transform_indices = @transform_0, window_bounds = array<i64: 16, 64>}, {pipeline_mode = #tpu.pipeline_mode<synchronous>, transform_indices = @transform_1, window_bounds = array<i64: 64, 128>}, {transform_indices = @transform_2, window_bounds = array<i64: 16, 128>}]} {
    %c0 = arith.constant 0 : index
    %c0_0 = arith.constant 0 : index
    %0 = vector.load %arg1[%c0, %c0_0] : memref<16x64xbf16, #tpu.memory_space<vmem>>, vector<16x64xbf16>
    %c0_1 = arith.constant 0 : index
    %c0_2 = arith.constant 0 : index
    %1 = vector.load %arg2[%c0_1, %c0_2] : memref<64x128xbf16, #tpu.memory_space<vmem>>, vector<64x128xbf16>
    %cst = arith.constant dense<0.000000e+00> : vector<16x128xf32>
    %2 = tpu.matmul %0, %1, %cst {dimension_numbers = #tpu.dot_dimension_numbers<[1], [0], [0], [1], [0, 0, 1, 1], [], []>} : vector<16x64xbf16>, vector<64x128xbf16>, vector<16x128xf32> -> vector<16x128xf32>
    %3 = arith.truncf %2 : vector<16x128xf32> to vector<16x128xbf16>
    %c0_3 = arith.constant 0 : index
    %c0_4 = arith.constant 0 : index
    %4 = vector.load %arg3[%c0_3, %c0_4] : memref<16x128xbf16, #tpu.memory_space<vmem>>, vector<16x128xbf16>
    tpu.vector_store %arg3[%c0_3, %c0_4], %3 {strides = array<i32>} : memref<16x128xbf16, #tpu.memory_space<vmem>>, vector<16x128xbf16>,
    return
  }
  func.func @transform_0(%arg0: i32) -> (i32, i32) {
    %c0_i32 = arith.constant 0 : i32
    %c0_i32_0 = arith.constant 0 : i32
    return %arg0, %c0_i32 : i32, i32
  }
  func.func @transform_1(%arg0: i32) -> (i32, i32) {
    %c0_i32 = arith.constant 0 : i32
    %c0_i32_0 = arith.constant 0 : i32
    %c0_i32_1 = arith.constant 0 : i32
    return %c0_i32, %c0_i32_0 : i32, i32
  }
  func.func @transform_2(%arg0: i32) -> (i32, i32) {
    %c0_i32 = arith.constant 0 : i32
    %c0_i32_0 = arith.constant 0 : i32
    return %arg0, %c0_i32 : i32, i32
  }
}

module attributes {stable_mosaic.version = 11 : i64} {
  func.func @matmul_bias_alias_kernel(%arg0: i32, %arg1: i32, %arg2: memref<16x64xbf16, #tpu.memory_space<vmem>>, %arg3: memref<64x128xbf16, #tpu.memory_space<vmem>>, %arg4: memref<1x128xf32, #tpu.memory_space<vmem>>, %arg5: memref<32x512xbf16, #tpu.memory_space<any>>, %arg6: memref<16x128xbf16, #tpu.memory_space<vmem>>) attributes {dimension_semantics = [#tpu.dimension_semantics<parallel>, #tpu.dimension_semantics<parallel>], iteration_bounds = array<i64: 1, 2>, scalar_prefetch = 0 : i64, scratch_operands = 0 : i64, tpu.core_type = #tpu.core_type<tc>, window_params = [{transform_indices = @transform_0, window_bounds = array<i64: 16, 64>}, {transform_indices = @transform_1, window_bounds = array<i64: 64, 128>}, {transform_indices = @transform_2, window_bounds = array<i64: 1, 128>}, {}, {transform_indices = @transform_4, window_bounds = array<i64: 16, 128>}]} {
    %c0 = arith.constant 0 : index
    %c0_0 = arith.constant 0 : index
    %0 = vector.load %arg2[%c0, %c0_0] : memref<16x64xbf16, #tpu.memory_space<vmem>>, vector<16x64xbf16>
    %c0_1 = arith.constant 0 : index
    %c0_2 = arith.constant 0 : index
    %1 = vector.load %arg3[%c0_1, %c0_2] : memref<64x128xbf16, #tpu.memory_space<vmem>>, vector<64x128xbf16>
    %cst = arith.constant dense<0.000000e+00> : vector<16x128xf32>
    %2 = tpu.matmul %0, %1, %cst {dimension_numbers = #tpu.dot_dimension_numbers<[1], [0], [0], [1], [0, 0, 1, 1], [], []>} : vector<16x64xbf16>, vector<64x128xbf16>, vector<16x128xf32> -> vector<16x128xf32>
    %c0_3 = arith.constant 0 : index
    %c0_4 = arith.constant 0 : index
    %3 = vector.load %arg4[%c0_3, %c0_4] : memref<1x128xf32, #tpu.memory_space<vmem>>, vector<1x128xf32>
    %4 = vector.broadcast %3 : vector<1x128xf32> to vector<16x128xf32>
    %5 = arith.addf %2, %4 : vector<16x128xf32>
    %6 = arith.truncf %5 : vector<16x128xf32> to vector<16x128xbf16>
    %c0_5 = arith.constant 0 : index
    %c0_6 = arith.constant 0 : index
    %7 = vector.load %arg6[%c0_5, %c0_6] : memref<16x128xbf16, #tpu.memory_space<vmem>>, vector<16x128xbf16>
    tpu.vector_store %arg6[%c0_5, %c0_6], %6 {strides = array<i32>} : memref<16x128xbf16, #tpu.memory_space<vmem>>, vector<16x128xbf16>,
    return
  }
  func.func @transform_0(%arg0: i32, %arg1: i32) -> (i32, i32) {
    %c0_i32 = arith.constant 0 : i32
    %c0_i32_0 = arith.constant 0 : i32
    return %arg1, %c0_i32 : i32, i32
  }
  func.func @transform_1(%arg0: i32, %arg1: i32) -> (i32, i32) {
    %c0_i32 = arith.constant 0 : i32
    %c0_i32_0 = arith.constant 0 : i32
    return %c0_i32, %arg0 : i32, i32
  }
  func.func @transform_2(%arg0: i32, %arg1: i32) -> (i32, i32) {
    %c0_i32 = arith.constant 0 : i32
    %c0_i32_0 = arith.constant 0 : i32
    return %c0_i32, %arg0 : i32, i32
  }
  func.func @transform_4(%arg0: i32, %arg1: i32) -> (i32, i32) {
    %c1_i32 = arith.constant 1 : i32
    %0 = arith.addi %c1_i32, %arg0 : i32
    %c0_i32 = arith.constant 0 : i32
    return %arg1, %0 : i32, i32
  }
}

module attributes {stable_mosaic.version = 11 : i64} {
  func.func @matmul_bias_alias_kernel(%arg0: i32, %arg1: i32, %arg2: memref<16x128xbf16, #tpu.memory_space<vmem>>, %arg3: memref<128x128xbf16, #tpu.memory_space<vmem>>, %arg4: memref<1x128xf32, #tpu.memory_space<vmem>>, %arg5: memref<32x512xbf16, #tpu.memory_space<any>>, %arg6: memref<16x128xbf16, #tpu.memory_space<vmem>>) attributes {dimension_semantics = [#tpu.dimension_semantics<parallel>, #tpu.dimension_semantics<parallel>], iteration_bounds = array<i64: 2, 2>, scalar_prefetch = 0 : i64, scratch_operands = 0 : i64, tpu.core_type = #tpu.core_type<tc>, window_params = [{transform_indices = @transform_0, window_bounds = array<i64: 16, 128>}, {transform_indices = @transform_1, window_bounds = array<i64: 128, 128>}, {transform_indices = @transform_2, window_bounds = array<i64: 1, 128>}, {}, {transform_indices = @transform_4, window_bounds = array<i64: 16, 128>}]} {
    %c0 = arith.constant 0 : index
    %c0_0 = arith.constant 0 : index
    %0 = vector.load %arg2[%c0, %c0_0] : memref<16x128xbf16, #tpu.memory_space<vmem>>, vector<16x128xbf16>
    %c0_1 = arith.constant 0 : index
    %c0_2 = arith.constant 0 : index
    %1 = vector.load %arg3[%c0_1, %c0_2] : memref<128x128xbf16, #tpu.memory_space<vmem>>, vector<128x128xbf16>
    %cst = arith.constant dense<0.000000e+00> : vector<16x128xf32>
    %2 = tpu.matmul %0, %1, %cst {dimension_numbers = #tpu.dot_dimension_numbers<[1], [0], [0], [1], [0, 0, 1, 1], [], []>} : vector<16x128xbf16>, vector<128x128xbf16>, vector<16x128xf32> -> vector<16x128xf32>
    %c0_3 = arith.constant 0 : index
    %c0_4 = arith.constant 0 : index
    %3 = vector.load %arg4[%c0_3, %c0_4] : memref<1x128xf32, #tpu.memory_space<vmem>>, vector<1x128xf32>
    %4 = vector.broadcast %3 : vector<1x128xf32> to vector<16x128xf32>
    %5 = arith.addf %2, %4 : vector<16x128xf32>
    %6 = arith.truncf %5 : vector<16x128xf32> to vector<16x128xbf16>
    %c0_5 = arith.constant 0 : index
    %c0_6 = arith.constant 0 : index
    %7 = vector.load %arg6[%c0_5, %c0_6] : memref<16x128xbf16, #tpu.memory_space<vmem>>, vector<16x128xbf16>
    tpu.vector_store %arg6[%c0_5, %c0_6], %6 {strides = array<i32>} : memref<16x128xbf16, #tpu.memory_space<vmem>>, vector<16x128xbf16>,
    return
  }
  func.func @transform_0(%arg0: i32, %arg1: i32) -> (i32, i32) {
    %c0_i32 = arith.constant 0 : i32
    %c0_i32_0 = arith.constant 0 : i32
    return %arg1, %c0_i32 : i32, i32
  }
  func.func @transform_1(%arg0: i32, %arg1: i32) -> (i32, i32) {
    %c0_i32 = arith.constant 0 : i32
    %c0_i32_0 = arith.constant 0 : i32
    return %c0_i32, %arg0 : i32, i32
  }
  func.func @transform_2(%arg0: i32, %arg1: i32) -> (i32, i32) {
    %c0_i32 = arith.constant 0 : i32
    %c0_i32_0 = arith.constant 0 : i32
    return %c0_i32, %arg0 : i32, i32
  }
  func.func @transform_4(%arg0: i32, %arg1: i32) -> (i32, i32) {
    %c2_i32 = arith.constant 2 : i32
    %0 = arith.addi %c2_i32, %arg0 : i32
    %c0_i32 = arith.constant 0 : i32
    return %arg1, %0 : i32, i32
  }
}

</mosaic_0001>

<bundles_post_ra>
// kernel: _lambda_.4
= control target key start
LH: loop header
LB: loop body
LE: loop exit
PB: predicated region body
PF: predicated region fallthrough
CT: control target
= control target key end

     0   :  { %s618_s12 = smov 0   ;;  %s620_s13 = smov 0   ;;  %s702_s0 = inlined_call_operand.vmem [shape: bf16[32,64], index: 0, kind: input, shape index: {}]   ;;  %s703_s1 = inlined_call_operand.vmem [shape: bf16[64,128], index: 1, kind: input, shape index: {}]   ;;  %s704_s2 = inlined_call_operand.vmem [shape: f32[1,128], index: 2, kind: input, shape index: {}]   ;;  %s705_s3 = inlined_call_operand.vmem [shape: bf16[32,512], index: 3, kind: output, shape index: {}]  }
   0x1   :  { %s622_s14 = smov 0   ;;  %s624_s15 = smov 0  }
   0x2   :  { %s626_s16 = smov 0  }
   0x3 LB: > { %s458_s17 = sadd.s32 4294967295, %s594_s16   ;;  %s22_s18 = sadd.s32 1, %s590_s15  ;;  %s594_s16 = sphi %s626_s16, %s13_s16   ;;  %s590_s15 = sphi %s624_s15, %s710_s15   ;;  %s586_s14 = sphi %s622_s14, %s709_s14   ;;  %s582_s13 = sphi %s620_s13, %s708_s13   ;;  %s578_s12 = sphi %s618_s12, %s707_s12  }
   0x4   : > { %p23_p0 = scmp.ge.s32.totalorder %s22_s18, 2  ;;  %s112_s19 = sadd.s32 1, %s582_s13 }
   0x5   : > { %p122_p1 = scmp.ne.s32.totalorder %s582_s13, %s578_s12  ;;  %p123_p2 = scmp.eq.s32.totalorder %s458_s17, 1 }
   0x6   : > { %s712_s18 = smov (%p23_p0, %s22_s18), 0  ;;  %p464_p4 = scmp.ge.s32.totalorder %s594_s16, 1 }
   0x7   : > { %p650_p3 = por %p123_p2, %p122_p1  ;;  %s107_s21 = ssub.s32 %s590_s15, %s712_s18 }
   0x8   : > { %p169_p5 = scmp.lt.s32.totalorder %s594_s16, 3  ;;  %p110_p6 = scmp.eq.s32.totalorder %s107_s21, 0 }
   0xa   : > { %p170_p7 = pnand %p464_p4, %p169_p5 }
   0xb   : > { %s659_s22 = scalar_select %p110_p6, %s582_s13, %s112_s19  }
   0xc   : > { %173 = sbr.rel (%p170_p7) target bundleno = 256 (0x100), region = 32  ;;  %v551_v0 = vld [vmem:[%s703_s1] sm:$0xff] (!%p170_p7)   ;;  %v596_v1 = vmov (!%p170_p7), 0.0   ;;  %v552_v2 = vld [vmem:[%s703_s1 + $0x8] sm:$0xff] (!%p170_p7)   ;;  %vm597_vm0 = vmmov (!%p170_p7), 0   ;;  %s466_s27 = sshll.u32 (!%p170_p7), %s586_s14, 1 }
   0xd   : > { %497 = vmatprep.subr.bf16.mxu0 (!%p170_p7), %v596_v1  ;;  %505 = vmatprep.mubr.msk.bf16.mxu0 (!%p170_p7), %vm597_vm0, %v596_v1  ;;  %p200_p8 = scmp.lt.s32.totalorder (!%p170_p7), %s466_s27, 3  ;;  %v553_v3 = vld [vmem:[%s703_s1 + $0x10] sm:$0xff] (!%p170_p7)   ;;  %v554_v4 = vld [vmem:[%s703_s1 + $0x18] sm:$0xff] (!%p170_p7)   ;;  %vm260_vm1 = vcmask (!%p170_p7), 523264   ;;  %s196_s9 = sand.u32 (!%p170_p7), 1, %s578_s12  }
   0xe   : > { %498 = vmatpush3.bf16.msra.mxu0 (!%p170_p7), %v551_v0  ;;  %v468_v6 = vld [vmem:[%s704_s2] ss:$0 sm:$0xff] (!%p170_p7)  ;;  %s465_s17 = sshll.u32 (!%p170_p7), %s196_s9, 3 }
   0xf   : > { %499 = vmatprep.subr.bf16.mxu0 (!%p170_p7), %v596_v1  ;;  %s198_s19 = scalar_lea.vmem (!%p170_p7), [#allocation2], %s465_s17 }
  0x12   : > { %500 = vmatpush3.bf16.msra.mxu0 (!%p170_p7), %v552_v2 }
  0x13   : > { %s714_s27 = smov (!%p200_p8, %s466_s27), 3  ;;  %501 = vmatprep.subr.bf16.mxu0 %v596_v1  ;;  %s486_s21 = sshll.u32 (%p650_p3), %s586_s14, 5 }
  0x14   : > { %s467_s30 = sshll.u32 %s714_s27, 2  ;;  %s326_s24 = scalar_lea.vmem (%p650_p3), %s705_s3, %s486_s21 }
  0x15   : > { %s203_s6 = scalar_lea.vmem %s702_s0, %s467_s30 }
  0x16   : > { %502 = vmatpush3.bf16.msra.mxu0 %v553_v3  ;;  %v555_v5 = vld [vmem:[%s203_s6] sm:$0xff]  }
  0x17   : > { %503 = vmatprep.subr.bf16.mxu0 %v596_v1 }
  0x1a   : > { %504 = vmatpush3.bf16.msra.mxu0 %v554_v4 }
  0x1d   : > { %506 = vmatmul.mubr.msk.bf16.vlgmr.msra.gmra.mrb[0].mxu0 %vm260_vm1, %v555_v5 }
  0xf0   : > { %v298_v7 = vpop.f32.mrb[0].mxu0 }
  0xf1   : > { %v507_v8 = vpop.f32.mrb[1].mxu0  ;;  %v299_v10 = vadd.f32 %v468_v6, %v298_v7  ;;  %321 = sbr.rel (!%p650_p3) target bundleno = 256 (0x100), region = 36 }
  0xf2   : > { %v301_v9 = vpop.f32.mrb[2].mxu0 }
  0xf3   : > { %v302_v11 = vadd.f32 %v468_v6, %v301_v9  ;;  %v508_v12 = vpop.f32.mrb[3].mxu0 }
  0xf5   : > { %v490_v13 = vpack.c.bf16 %v302_v11, %v299_v10 }
  0xf7   : > { %491 = vst [vmem:[%s198_s19] sm:$0xff] %v490_v13  }
  0xfe   : > { %v342_v14 = vld [vmem:[%s198_s19] sm:$0xf]  ;;  %v344_v15 = vld [vmem:[%s198_s19 + $0x4] sm:$0xf] }
  0xff   : > { %343 = vst [vmem:[%s326_s24] sm:$0xf] %v342_v14  ;;  %345 = vst [vmem:[%s326_s24 + $0x10] sm:$0xf] %v344_v15 }
 0x100 PF: > { %s13_s16 = sadd.s32 1, %s594_s16   ;;  %s707_s12 = smov %s582_s13 }
 0x101   : > { %p10_p9 = scmp.ge.s32.totalorder %s13_s16, 4   ;;  %s708_s13 = smov %s659_s22 }
 0x102   : > { %s709_s14 = smov %s590_s15  ;;  %s710_s15 = smov %s712_s18 }
 0x103   :  { %12 = sbr.rel (!%p10_p9) target bundleno = 3 (0x3), region = 109 }

// kernel: _lambda_.6
= control target key start
LH: loop header
LB: loop body
LE: loop exit
PB: predicated region body
PF: predicated region fallthrough
CT: control target
= control target key end

     0   :  { %s381_s9 = smov 0   ;;  %s410_s0 = inlined_call_operand.vmem [shape: bf16[32,64], index: 0, kind: input, shape index: {}]   ;;  %s411_s1 = inlined_call_operand.vmem [shape: bf16[64,128], index: 1, kind: input, shape index: {}]   ;;  %s412_s2 = inlined_call_operand.vmem [shape: bf16[32,128], index: 2, kind: output, shape index: {}]  }
   0x1 LB: > { %s298_s10 = sadd.s32 4294967295, %s362_s9   ;;  %p302_p0 = scmp.ge.s32.totalorder %s362_s9, 1  ;;  %s362_s9 = sphi %s381_s9, %s12_s9  }
   0x2   : > { %p113_p1 = scmp.lt.s32.totalorder %s362_s9, 3 }
   0x4   : > { %p114_p2 = pnand %p302_p0, %p113_p1 }
   0x5   : > { %v351_v0 = vld [vmem:[%s411_s1] sm:$0xff] (!%p114_p2)   ;;  %v364_v1 = vmov (!%p114_p2), 0.0   ;;  %v352_v2 = vld [vmem:[%s411_s1 + $0x8] sm:$0xff] (!%p114_p2)   ;;  %vm365_vm0 = vmmov (!%p114_p2), 0   ;;  %s303_s15 = sshll.u32 (!%p114_p2), %s298_s10, 1  ;;  %v353_v3 = vld [vmem:[%s411_s1 + $0x10] sm:$0xff] (!%p114_p2)  }
   0x6   : > { %117 = sbr.rel (%p114_p2) target bundleno = 239 (0xef), region = 28  ;;  %329 = vmatprep.subr.bf16.mxu0 (!%p114_p2), %v364_v1  ;;  %337 = vmatprep.mubr.msk.bf16.mxu0 (!%p114_p2), %vm365_vm0, %v364_v1  ;;  %p136_p3 = scmp.lt.s32.totalorder (!%p114_p2), %s303_s15, 3  ;;  %v354_v4 = vld [vmem:[%s411_s1 + $0x18] sm:$0xff] (!%p114_p2)   ;;  %vm187_vm1 = vcmask (!%p114_p2), 523264  }
   0x7   : > { %330 = vmatpush3.bf16.msra.mxu0 (!%p114_p2), %v351_v0 }
   0x8   : > { %331 = vmatprep.subr.bf16.mxu0 (!%p114_p2), %v364_v1 }
   0xb   : > { %332 = vmatpush3.bf16.msra.mxu0 (!%p114_p2), %v352_v2 }
   0xc   : > { %333 = vmatprep.subr.bf16.mxu0 (!%p114_p2), %v364_v1 }
   0xd   : > { %s414_s15 = smov (!%p136_p3, %s303_s15), 3 }
   0xe   : > { %s304_s18 = sshll.u32 %s414_s15, 2 }
   0xf   : > { %s139_s21 = scalar_lea.vmem %s410_s0, %s304_s18  ;;  %334 = vmatpush3.bf16.msra.mxu0 %v353_v3  ;;  %s145_s26 = scalar_lea.vmem %s412_s2, %s304_s18 }
  0x10   : > { %335 = vmatprep.subr.bf16.mxu0 %v364_v1  ;;  %v355_v5 = vld [vmem:[%s139_s21] sm:$0xff]  }
  0x13   : > { %336 = vmatpush3.bf16.msra.mxu0 %v354_v4 }
  0x16   : > { %338 = vmatmul.mubr.msk.bf16.vlgmr.msra.gmra.mrb[0].mxu0 %vm187_vm1, %v355_v5 }
  0xe9   : > { %v225_v6 = vpop.f32.mrb[0].mxu0 }
  0xea   : > { %v339_v7 = vpop.f32.mrb[1].mxu0 }
  0xeb   : > { %v228_v8 = vpop.f32.mrb[2].mxu0 }
  0xec   : > { %v322_v9 = vpack.c.bf16 %v228_v8, %v225_v6  ;;  %v340_v10 = vpop.f32.mrb[3].mxu0 }
  0xee   : > { %323 = vst [vmem:[%s145_s26] sm:$0xff] %v322_v9  }
  0xef PF: > { %s12_s9 = sadd.s32 1, %s362_s9  }
  0xf0   : > { %p9_p4 = scmp.ge.s32.totalorder %s12_s9, 4  }
  0xf2   :  { %11 = sbr.rel (!%p9_p4) target bundleno = 1 (0x1), region = 58 }

// kernel: _lambda_.5
= control target key start
LH: loop header
LB: loop body
LE: loop exit
PB: predicated region body
PF: predicated region fallthrough
CT: control target
= control target key end

     0   :  { %s629_s15 = smov 0   ;;  %s631_s16 = smov 0   ;;  %s713_s0 = inlined_call_operand.vmem [shape: bf16[32,64], index: 0, kind: input, shape index: {}]   ;;  %s714_s1 = inlined_call_operand.vmem [shape: bf16[64,128], index: 1, kind: input, shape index: {}]   ;;  %s715_s2 = inlined_call_operand.vmem [shape: f32[1,128], index: 2, kind: input, shape index: {}]   ;;  %s716_s3 = inlined_call_operand.vmem [shape: bf16[32,512], index: 3, kind: input, shape index: {}, may-alias: {3,4}]   ;;  %s717_s4 = inlined_call_operand.vmem [shape: bf16[32,512], index: 4, kind: output, shape index: {}, may-alias: {3,4}]  }
   0x1   :  { %s633_s17 = smov 0   ;;  %s635_s18 = smov 0  }
   0x2   :  { %s637_s19 = smov 0  }
   0x3 LB: > { %s464_s3 = sadd.s32 4294967295, %s600_s19   ;;  %s23_s20 = sadd.s32 1, %s596_s18  ;;  %s600_s19 = sphi %s637_s19, %s14_s19   ;;  %s596_s18 = sphi %s635_s18, %s722_s18   ;;  %s592_s17 = sphi %s633_s17, %s721_s17   ;;  %s588_s16 = sphi %s631_s16, %s720_s16   ;;  %s584_s15 = sphi %s629_s15, %s719_s15  }
   0x4   : > { %p24_p0 = scmp.ge.s32.totalorder %s23_s20, 2  ;;  %s115_s21 = sadd.s32 1, %s588_s16 }
   0x5   : > { %p125_p1 = scmp.ne.s32.totalorder %s588_s16, %s584_s15  ;;  %p126_p2 = scmp.eq.s32.totalorder %s464_s3, 1 }
   0x6   : > { %s724_s20 = smov (%p24_p0, %s23_s20), 0  ;;  %p470_p4 = scmp.ge.s32.totalorder %s600_s19, 1 }
   0x7   : > { %p661_p3 = por %p126_p2, %p125_p1  ;;  %s110_s23 = ssub.s32 %s596_s18, %s724_s20 }
   0x8   : > { %p172_p5 = scmp.lt.s32.totalorder %s600_s19, 3  ;;  %p113_p6 = scmp.eq.s32.totalorder %s110_s23, 0 }
   0xa   : > { %p173_p7 = pnand %p470_p4, %p172_p5 }
   0xb   : > { %s670_s24 = scalar_select %p113_p6, %s588_s16, %s115_s21  }
   0xc   : > { %176 = sbr.rel (%p173_p7) target bundleno = 256 (0x100), region = 32  ;;  %v557_v0 = vld [vmem:[%s714_s1] sm:$0xff] (!%p173_p7)   ;;  %v602_v1 = vmov (!%p173_p7), 0.0   ;;  %v558_v2 = vld [vmem:[%s714_s1 + $0x8] sm:$0xff] (!%p173_p7)   ;;  %vm603_vm0 = vmmov (!%p173_p7), 0   ;;  %s472_s29 = sshll.u32 (!%p173_p7), %s592_s17, 1 }
   0xd   : > { %503 = vmatprep.subr.bf16.mxu0 (!%p173_p7), %v602_v1  ;;  %511 = vmatprep.mubr.msk.bf16.mxu0 (!%p173_p7), %vm603_vm0, %v602_v1  ;;  %p203_p8 = scmp.lt.s32.totalorder (!%p173_p7), %s472_s29, 3  ;;  %v559_v3 = vld [vmem:[%s714_s1 + $0x10] sm:$0xff] (!%p173_p7)   ;;  %v560_v4 = vld [vmem:[%s714_s1 + $0x18] sm:$0xff] (!%p173_p7)   ;;  %vm264_vm1 = vcmask (!%p173_p7), 523264   ;;  %s199_s12 = sand.u32 (!%p173_p7), 1, %s584_s15  }
   0xe   : > { %504 = vmatpush3.bf16.msra.mxu0 (!%p173_p7), %v557_v0  ;;  %v474_v6 = vld [vmem:[%s715_s2] ss:$0 sm:$0xff] (!%p173_p7)  ;;  %s471_s3 = sshll.u32 (!%p173_p7), %s199_s12, 3 }
   0xf   : > { %505 = vmatprep.subr.bf16.mxu0 (!%p173_p7), %v602_v1  ;;  %s201_s21 = scalar_lea.vmem (!%p173_p7), [#allocation2], %s471_s3 }
  0x12   : > { %506 = vmatpush3.bf16.msra.mxu0 (!%p173_p7), %v558_v2 }
  0x13   : > { %s726_s29 = smov (!%p203_p8, %s472_s29), 3  ;;  %507 = vmatprep.subr.bf16.mxu0 %v602_v1  ;;  %s492_s23 = sshll.u32 (%p661_p3), %s592_s17, 5 }
  0x14   : > { %s473_s6 = sshll.u32 %s726_s29, 2  ;;  %s409_s26 = scalar_lea.vmem (%p661_p3), %s717_s4, %s492_s23 }
  0x15   : > { %s206_s9 = scalar_lea.vmem %s713_s0, %s473_s6 }
  0x16   : > { %508 = vmatpush3.bf16.msra.mxu0 %v559_v3  ;;  %v561_v5 = vld [vmem:[%s206_s9] sm:$0xff]  }
  0x17   : > { %509 = vmatprep.subr.bf16.mxu0 %v602_v1 }
  0x1a   : > { %510 = vmatpush3.bf16.msra.mxu0 %v560_v4 }
  0x1d   : > { %512 = vmatmul.mubr.msk.bf16.vlgmr.msra.gmra.mrb[0].mxu0 %vm264_vm1, %v561_v5 }
  0xf0   : > { %v302_v7 = vpop.f32.mrb[0].mxu0 }
  0xf1   : > { %v513_v8 = vpop.f32.mrb[1].mxu0  ;;  %v303_v10 = vadd.f32 %v474_v6, %v302_v7  ;;  %325 = sbr.rel (!%p661_p3) target bundleno = 256 (0x100), region = 36 }
  0xf2   : > { %v305_v9 = vpop.f32.mrb[2].mxu0 }
  0xf3   : > { %v306_v11 = vadd.f32 %v474_v6, %v305_v9  ;;  %v514_v12 = vpop.f32.mrb[3].mxu0 }
  0xf5   : > { %v496_v13 = vpack.c.bf16 %v306_v11, %v303_v10 }
  0xf7   : > { %497 = vst [vmem:[%s201_s21] sm:$0xff] %v496_v13  }
  0xfe   : > { %v347_v14 = vld [vmem:[%s201_s21] sm:$0xf]  ;;  %v349_v15 = vld [vmem:[%s201_s21 + $0x4] sm:$0xf] }
  0xff   : > { %486 = vst [vmem:[%s409_s26 + $0x4] sm:$0xf] %v347_v14  ;;  %487 = vst [vmem:[%s409_s26 + $0x14] sm:$0xf] %v349_v15 }
 0x100 PF: > { %s14_s19 = sadd.s32 1, %s600_s19   ;;  %s719_s15 = smov %s588_s16 }
 0x101   : > { %p11_p9 = scmp.ge.s32.totalorder %s14_s19, 4   ;;  %s720_s16 = smov %s670_s24 }
 0x102   : > { %s721_s17 = smov %s596_s18  ;;  %s722_s18 = smov %s724_s20 }
 0x103   :  { %13 = sbr.rel (!%p11_p9) target bundleno = 3 (0x3), region = 109 }

// kernel: _lambda_.7
= control target key start
LH: loop header
LB: loop body
LE: loop exit
PB: predicated region body
PF: predicated region fallthrough
CT: control target
= control target key end

     0   :  { %s848_s15 = smov 0   ;;  %s850_s16 = smov 0   ;;  %s1001_s0 = inlined_call_operand.vmem [shape: bf16[32,128], index: 0, kind: input, shape index: {}]   ;;  %s1002_s1 = inlined_call_operand.vmem [shape: bf16[128,256], index: 1, kind: input, shape index: {}]   ;;  %s1003_s2 = inlined_call_operand.vmem [shape: f32[1,256], index: 2, kind: input, shape index: {}]   ;;  %s1004_s3 = inlined_call_operand.vmem [shape: bf16[32,512], index: 3, kind: input, shape index: {}, may-alias: {3,4}]   ;;  %s1005_s4 = inlined_call_operand.vmem [shape: bf16[32,512], index: 4, kind: output, shape index: {}, may-alias: {3,4}]  }
   0x1   :  { %s852_s17 = smov 0   ;;  %s854_s18 = smov 0  }
   0x2   :  { %s856_s19 = smov 0   ;;  %s858_s20 = smov 0  }
   0x3   :  { %s860_s21 = smov 0   ;;  %s862_s22 = smov 0  }
   0x4   :  { %s864_s3 = smov 0  }
   0x5 LB: > { %s600_s23 = sadd.s32 4294967295, %s819_s3   ;;  %s23_s24 = sadd.s32 1, %s811_s21  ;;  %s819_s3 = sphi %s864_s3, %s14_s3   ;;  %s815_s22 = sphi %s862_s22, %s1015_s22   ;;  %s811_s21 = sphi %s860_s21, %s1014_s21   ;;  %s807_s20 = sphi %s858_s20, %s1013_s20   ;;  %s803_s19 = sphi %s856_s19, %s1012_s19   ;;  %s799_s18 = sphi %s854_s18, %s1011_s18   ;;  %s795_s17 = sphi %s852_s17, %s1010_s17   ;;  %s791_s16 = sphi %s850_s16, %s1009_s16   ;;  %s787_s15 = sphi %s848_s15, %s1008_s15  }
   0x6   : > { %p24_p0 = scmp.ge.s32.totalorder %s23_s24, 2  ;;  %s26_s25 = sadd.s32 1, %s815_s22 }
   0x7   : > { %s59_s26 = sadd.s32 1, %s799_s18  ;;  %p66_p1 = scmp.ne.s32.totalorder %s799_s18, %s795_s17 }
   0x8   : > { %s1017_s24 = smov (%p24_p0, %s23_s24), 0  ;;  %s1019_s25 = smov (!%p24_p0, %s26_s25), %s815_s22 }
   0x9   : > { %p67_p2 = scmp.eq.s32.totalorder %s819_s3, 0  ;;  %s108_s27 = sadd.s32 2, %s815_s22 }
   0xa   : > { %p28_p3 = scmp.ge.s32.totalorder %s1019_s25, 2  ;;  %s110_s28 = ssub.s32 %s811_s21, %s1017_s24 }
   0xb   : > { %p906_p4 = por %p67_p2, %p66_p1  ;;  %s115_s30 = sadd.s32 1, %s791_s16 }
   0xc   : > { %s1021_s25 = smov (%p28_p3, %s1019_s25), 0  ;;  %p125_p5 = scmp.ne.s32.totalorder %s791_s16, %s787_s15 }
   0xd   : > { %p126_p6 = scmp.eq.s32.totalorder %s600_s23, 3  ;;  %s56_s5 = ssub.s32 %s815_s22, %s1021_s25 }
   0xe   : > { %s109_s6 = sadd.s32 2, %s1021_s25  ;;  %p57_p7 = scmp.eq.s32.totalorder %s56_s5, 0 }
   0xf   : > { %s111_s7 = ssub.s32 %s108_s27, %s109_s6  ;;  %p918_p8 = por %p126_p6, %p125_p5 }
  0x10   : > { %s112_s8 = sor.u32 %s111_s7, %s110_s28  ;;  %p603_p10 = scmp.ge.s32.totalorder %s819_s3, 4 }
  0x11   : > { %s923_s10 = scalar_select %p57_p7, %s799_s18, %s59_s26  }
  0x12   : > { %p113_p9 = scmp.eq.s32.totalorder %s112_s8, 0  ;;  %148 = sbr.rel (%p603_p10) target bundleno = 39 (0x27), region = 16 }
  0x14   : > { %s926_s11 = scalar_select %p113_p9, %s791_s16, %s115_s30  }
  0x19   : > { %160 = sbr.rel (!%p906_p4) target bundleno = 39 (0x27), region = 24  ;;  %s162_s12 = sand.u32 (%p906_p4), 1, %s799_s18  }
  0x1a   : > { %s605_s13 = sshll.u32 (%p906_p4), %s815_s22, 2  ;;  %s604_s14 = sshll.u32 (%p906_p4), %s162_s12, 6 }
  0x1b   : > { %s936_s28 = scalar_lea.vmem (%p906_p4), %s1002_s1, %s605_s13  ;;  %s164_s26 = scalar_lea.vmem (%p906_p4), [#allocation2], %s604_s14 }
  0x1c   : > { %v182_v0 = vld [vmem:[%s936_s28] sm:$0xf] (%p906_p4)  ;;  %v184_v1 = vld [vmem:[%s936_s28 + $0x8] sm:$0xf] (%p906_p4)  ;;  %v186_v2 = vld [vmem:[%s936_s28 + $0x10] sm:$0xf] (%p906_p4) }
  0x1d   : > { %183 = vst [vmem:[%s164_s26] sm:$0xf] (%p906_p4), %v182_v0  ;;  %185 = vst [vmem:[%s164_s26 + $0x4] sm:$0xf] (%p906_p4), %v184_v1  ;;  %v188_v3 = vld [vmem:[%s936_s28 + $0x18] sm:$0xf] (%p906_p4) }
  0x1e   : > { %v190_v4 = vld [vmem:[%s936_s28 + $0x20] sm:$0xf] (%p906_p4)  ;;  %187 = vst [vmem:[%s164_s26 + $0x8] sm:$0xf] (%p906_p4), %v186_v2  ;;  %189 = vst [vmem:[%s164_s26 + $0xc] sm:$0xf] (%p906_p4), %v188_v3 }
  0x1f   : > { %191 = vst [vmem:[%s164_s26 + $0x10] sm:$0xf] (%p906_p4), %v190_v4  ;;  %v192_v5 = vld [vmem:[%s936_s28 + $0x28] sm:$0xf] (%p906_p4)  ;;  %v194_v6 = vld [vmem:[%s936_s28 + $0x30] sm:$0xf] (%p906_p4) }
  0x20   : > { %v196_v7 = vld [vmem:[%s936_s28 + $0x38] sm:$0xf]  ;;  %193 = vst [vmem:[%s164_s26 + $0x14] sm:$0xf] %v192_v5  ;;  %195 = vst [vmem:[%s164_s26 + $0x18] sm:$0xf] %v194_v6 }
  0x21   : > { %197 = vst [vmem:[%s164_s26 + $0x1c] sm:$0xf] %v196_v7  ;;  %v198_v8 = vld [vmem:[%s936_s28 + $0x40] sm:$0xf]  ;;  %v200_v9 = vld [vmem:[%s936_s28 + $0x48] sm:$0xf] }
  0x22   : > { %v202_v10 = vld [vmem:[%s936_s28 + $0x50] sm:$0xf]  ;;  %199 = vst [vmem:[%s164_s26 + $0x20] sm:$0xf] %v198_v8  ;;  %201 = vst [vmem:[%s164_s26 + $0x24] sm:$0xf] %v200_v9 }
  0x23   : > { %203 = vst [vmem:[%s164_s26 + $0x28] sm:$0xf] %v202_v10  ;;  %v204_v11 = vld [vmem:[%s936_s28 + $0x58] sm:$0xf]  ;;  %v206_v12 = vld [vmem:[%s936_s28 + $0x60] sm:$0xf] }
  0x24   : > { %v208_v13 = vld [vmem:[%s936_s28 + $0x68] sm:$0xf]  ;;  %205 = vst [vmem:[%s164_s26 + $0x2c] sm:$0xf] %v204_v11  ;;  %207 = vst [vmem:[%s164_s26 + $0x30] sm:$0xf] %v206_v12 }
  0x25   : > { %209 = vst [vmem:[%s164_s26 + $0x34] sm:$0xf] %v208_v13  ;;  %v210_v14 = vld [vmem:[%s936_s28 + $0x70] sm:$0xf]  ;;  %v212_v15 = vld [vmem:[%s936_s28 + $0x78] sm:$0xf] }
  0x26   : > { %211 = vst [vmem:[%s164_s26 + $0x38] sm:$0xf] %v210_v14  ;;  %213 = vst [vmem:[%s164_s26 + $0x3c] sm:$0xf] %v212_v15 }
  0x27 PF: > { %p606_p11 = scmp.ge.s32.totalorder %s819_s3, 1  ;;  %p273_p12 = scmp.lt.s32.totalorder %s819_s3, 5 }
  0x29   : > { %p274_p13 = pnand %p606_p11, %p273_p12 }
  0x2a   : > { %s280_s29 = sand.u32 (!%p274_p13), 1, %s795_s17   ;;  %s609_s30 = sshll.u32 (!%p274_p13), %s803_s19, 1  ;;  %v821_v16 = vmov (!%p274_p13), 0.0   ;;  %vm822_vm0 = vmmov (!%p274_p13), 0  }
  0x2b   : > { %277 = sbr.rel (%p274_p13) target bundleno = 304 (0x130), region = 69  ;;  %646 = vmatprep.subr.bf16.mxu0 (!%p274_p13), %v821_v16  ;;  %s607_s5 = sshll.u32 (!%p274_p13), %s280_s29, 6  ;;  %662 = vmatprep.mubr.msk.bf16.mxu0 (!%p274_p13), %vm822_vm0, %v821_v16 }
  0x2c   : > { %p311_p0 = scmp.lt.s32.totalorder (!%p274_p13), %s609_s30, 3  ;;  %s282_s6 = scalar_lea.vmem (!%p274_p13), [#allocation2], %s607_s5 }
  0x2d   : > { %v740_v17 = vld [vmem:[%s282_s6] sm:$0xff] (!%p274_p13)   ;;  %v741_v18 = vld [vmem:[%s282_s6 + $0x8] sm:$0xff] (!%p274_p13)   ;;  %v742_v19 = vld [vmem:[%s282_s6 + $0x10] sm:$0xff] (!%p274_p13)   ;;  %p316_p1 = scmp.lt.s32.totalorder (!%p274_p13), %s807_s20, 1  ;;  %s307_s28 = sand.u32 (!%p274_p13), 1, %s787_s15  }
  0x2e   : > { %647 = vmatpush3.bf16.msra.mxu0 (!%p274_p13), %v740_v17  ;;  %v743_v20 = vld [vmem:[%s282_s6 + $0x18] sm:$0xff] (!%p274_p13)   ;;  %v744_v21 = vld [vmem:[%s282_s6 + $0x20] sm:$0xff] (!%p274_p13)   ;;  %v745_v22 = vld [vmem:[%s282_s6 + $0x28] sm:$0xff] (!%p274_p13)   ;;  %s608_s26 = sshll.u32 (!%p274_p13), %s307_s28, 3 }
  0x2f   : > { %648 = vmatprep.subr.bf16.mxu0 (!%p274_p13), %v821_v16  ;;  %v746_v23 = vld [vmem:[%s282_s6 + $0x30] sm:$0xff] (!%p274_p13)   ;;  %v747_v24 = vld [vmem:[%s282_s6 + $0x38] sm:$0xff] (!%p274_p13)   ;;  %s309_s29 = scalar_lea.vmem (!%p274_p13), [#allocation3], %s608_s26 }
  0x32   : > { %s1023_s30 = smov (!%p311_p0, %s609_s30), 3  ;;  %649 = vmatpush3.bf16.msra.mxu0 %v741_v18 }
  0x33   : > { %s610_s7 = sshll.u32 %s1023_s30, 2  ;;  %650 = vmatprep.subr.bf16.mxu0 %v821_v16  ;;  %s624_s30 = sshll.u32 (%p918_p8), %s803_s19, 3 }
  0x34   : > { %s314_s17 = scalar_lea.vmem %s1001_s0, %s610_s7  ;;  %s542_s5 = sadd.s32 (%p918_p8), %s807_s20, %s624_s30 }
  0x35   : > { %v748_v25 = vld [vmem:[%s314_s17] sm:$0xff]   ;;  %s317_s13 = scalar_select %p316_p1, %s807_s20, 1 }
  0x36   : > { %651 = vmatpush3.bf16.msra.mxu0 %v742_v19  ;;  %s625_s15 = sshll.u32 (%p918_p8), %s542_s5, 2 }
  0x37   : > { %652 = vmatprep.subr.bf16.mxu0 %v821_v16  ;;  %s318_s27 = scalar_lea.vmem %s1003_s2, %s317_s13  ;;  %s544_s8 = scalar_lea.vmem (%p918_p8), %s1005_s4, %s625_s15 }
  0x38   : > { %v611_v26 = vld [vmem:[%s318_s27] ss:$0 sm:$0xff] }
  0x3a   : > { %653 = vmatpush3.bf16.msra.mxu0 %v743_v20 }
  0x3b   : > { %654 = vmatprep.subr.bf16.mxu0 %v821_v16 }
  0x3e   : > { %655 = vmatpush3.bf16.msra.mxu0 %v744_v21 }
  0x3f   : > { %656 = vmatprep.subr.bf16.mxu0 %v821_v16 }
  0x42   : > { %657 = vmatpush3.bf16.msra.mxu0 %v745_v22 }
  0x43   : > { %658 = vmatprep.subr.bf16.mxu0 %v821_v16 }
  0x46   : > { %659 = vmatpush3.bf16.msra.mxu0 %v746_v23 }
  0x47   : > { %660 = vmatprep.subr.bf16.mxu0 %v821_v16 }
  0x4a   : > { %661 = vmatpush3.bf16.msra.mxu0 %v747_v24 }
  0x4d   : > { %663 = vmatmul.mubr.bf16.vlgmr.msra.gmra.mrb[0].mxu0 %v748_v25 }
 0x120   : > { %v435_v27 = vpop.f32.mrb[0].mxu0 }
 0x121   : > { %v664_v28 = vpop.f32.mrb[1].mxu0  ;;  %v436_v30 = vadd.f32 %v611_v26, %v435_v27  ;;  %458 = sbr.rel (!%p918_p8) target bundleno = 304 (0x130), region = 77 }
 0x122   : > { %v438_v29 = vpop.f32.mrb[2].mxu0 }
 0x123   : > { %v439_v31 = vadd.f32 %v611_v26, %v438_v29  ;;  %v665_v32 = vpop.f32.mrb[3].mxu0 }
 0x125   : > { %v635_v33 = vpack.c.bf16 %v439_v31, %v436_v30 }
 0x127   : > { %636 = vst [vmem:[%s309_s29] sm:$0xff] %v635_v33  }
 0x12e   : > { %v480_v34 = vld [vmem:[%s309_s29] sm:$0xf]  ;;  %v482_v35 = vld [vmem:[%s309_s29 + $0x4] sm:$0xf] }
 0x12f   : > { %626 = vst [vmem:[%s544_s8 + $0x8] sm:$0xf] %v480_v34  ;;  %627 = vst [vmem:[%s544_s8 + $0x18] sm:$0xf] %v482_v35 }
 0x130 PF: > { %s14_s3 = sadd.s32 1, %s819_s3   ;;  %s1008_s15 = smov %s791_s16 }
 0x131   : > { %p11_p2 = scmp.ge.s32.totalorder %s14_s3, 6   ;;  %s1009_s16 = smov %s926_s11 }
 0x132   : > { %s1010_s17 = smov %s799_s18  ;;  %s1011_s18 = smov %s923_s10 }
 0x133   : > { %s1012_s19 = smov %s811_s21  ;;  %s1013_s20 = smov %s815_s22 }
 0x134   : > { %s1014_s21 = smov %s1017_s24  ;;  %s1015_s22 = smov %s1021_s25 }
 0x135   :  { %13 = sbr.rel (!%p11_p2) target bundleno = 5 (0x5), region = 155 }

</bundles_post_ra>
